<compile_context>
chip_gen: v5e
topology: v5e:2x2
jax: 0.10.0
libtpu: 0.0.40
codegen_flags: <defaults>
</compile_context>

<pallas_src>
import functools
import math

import jax
import jax.numpy as jnp
from jax.experimental import pallas as pl
from jax.experimental.pallas import tpu as pltpu


# ---------------------------------------------------------------------------
# Kernels
# ---------------------------------------------------------------------------

def _concat_tiled_kernel(x1_ref, x2_ref, o_ref, *, n1):
    """Grid = (batch_blocks, n1 + n2). Steps [0, n1) copy an x1 chunk, the
    remaining steps copy an x2 chunk. Output chunk j is written exactly once."""
    j = pl.program_id(1)

    @pl.when(j < n1)
    def _():
        o_ref[...] = x1_ref[...]

    @pl.when(j >= n1)
    def _():
        o_ref[...] = x2_ref[...]


def _concat_fallback_kernel(x1_ref, x2_ref, o_ref, *, f1):
    """Fallback (no common 128-multiple feature tile): full feature rows per
    batch block; still lane-dense because the arrays were flattened to 2-D."""
    o_ref[:, :f1] = x1_ref[...]
    o_ref[:, f1:] = x2_ref[...]


# ---------------------------------------------------------------------------
# Wrapper
# ---------------------------------------------------------------------------

def _choose_feature_tile(f1, f2, max_tile=2048):
    """Largest 128*2^k that divides both flattened feature lengths, <= max_tile."""
    g = math.gcd(f1, f2)
    if g % 128 != 0:
        return None
    t = 128
    while t * 2 <= max_tile and g % (t * 2) == 0:
        t *= 2
    return t


def concatenation(x1, x2):
    """Equivalent of torch.cat([x1, x2], dim=1) for 4-D NCHW tensors."""
    assert x1.ndim == 4 and x2.ndim == 4
    b, c1, h, w = x1.shape
    b2, c2, h2, w2 = x2.shape
    assert (b, h, w) == (b2, h2, w2), "non-concat dims must match"
    assert x1.dtype == x2.dtype
    dtype = x1.dtype
    itemsize = jnp.dtype(dtype).itemsize

    f1 = c1 * h * w
    f2 = c2 * h * w
    fo = f1 + f2

    # Lane-dense 2-D views: per-batch feature rows are contiguous, and the
    # two channel slabs become two contiguous row segments of the output.
    x1_2d = x1.reshape(b, f1)
    x2_2d = x2.reshape(b, f2)

    # Batch (sublane) block: multiple of the sublane packing, or full extent.
    sub = 8 * max(1, 4 // itemsize)
    if b % sub == 0:
        bt = min(b, 4 * sub)
        while b % bt != 0:
            bt -= sub
    else:
        bt = b
    n_b = b // bt

    bytes_accessed = 2 * (x1.size + x2.size) * itemsize  # read all + write all
    cost = pl.CostEstimate(flops=0, transcendentals=0,
                           bytes_accessed=bytes_accessed)

    t = _choose_feature_tile(f1, f2)
    if t is not None:
        # Tiled, pipelined copy: feature axis covers x1's chunks then x2's.
        n1, n2 = f1 // t, f2 // t
        grid = (n_b, n1 + n2)
        kernel = functools.partial(_concat_tiled_kernel, n1=n1)
        in_specs = [
            # Clamp the index of the input not in use this step so its block
            # index stays constant and Pallas skips the redundant DMA.
            pl.BlockSpec((bt, t), lambda ib, j: (ib, jnp.minimum(j, n1 - 1))),
            pl.BlockSpec((bt, t), lambda ib, j: (ib, jnp.maximum(j - n1, 0))),
        ]
        out_spec = pl.BlockSpec((bt, t), lambda ib, j: (ib, j))
        dims = ("parallel", "parallel")
        vmem_tile_bytes = 3 * 2 * bt * t * itemsize  # 3 buffers, double-buffered
    else:
        # Feature lengths share no 128-multiple tile: full-extent feature rows.
        grid = (n_b,)
        kernel = functools.partial(_concat_fallback_kernel, f1=f1)
        in_specs = [
            pl.BlockSpec((bt, f1), lambda ib: (ib, 0)),
            pl.BlockSpec((bt, f2), lambda ib: (ib, 0)),
        ]
        out_spec = pl.BlockSpec((bt, fo), lambda ib: (ib, 0))
        dims = ("parallel",)
        vmem_tile_bytes = 2 * 2 * bt * fo * itemsize

    vmem_limit = min(max(16 * 1024 * 1024, 2 * vmem_tile_bytes),
                     128 * 1024 * 1024)

    out_2d = pl.pallas_call(
        kernel,
        out_shape=jax.ShapeDtypeStruct((b, fo), dtype),
        grid=grid,
        in_specs=in_specs,
        out_specs=out_spec,
        compiler_params=pltpu.CompilerParams(
            dimension_semantics=dims,
            vmem_limit_bytes=vmem_limit,
        ),
        cost_estimate=cost,
    )(x1_2d, x2_2d)

    return out_2d.reshape(b, c1 + c2, h, w)


# ---------------------------------------------------------------------------
# Self-test
# ---------------------------------------------------------------------------

if __name__ == "__main__":
    key = jax.random.PRNGKey(0)
    k1, k2, k3, k4 = jax.random.split(key, 4)

    # Main case: NCHW, batch=2, channels=4+4, spatial=16x16 (tiled path).
    x1 = jax.random.normal(k1, (2, 4, 16, 16), dtype=jnp.float32)
    x2 = jax.random.normal(k2, (2, 4, 16, 16), dtype=jnp.float32)

    out = concatenation(x1, x2)
    jax.block_until_ready(out)

    ref = jnp.concatenate([x1, x2], axis=1)
    assert out.shape == (2, 8, 16, 16)
    assert out.dtype == x1.dtype
    assert jnp.array_equal(out, ref)

    # Odd-shaped case exercising the fallback (full-extent feature blocks).
    y1 = jax.random.normal(k3, (2, 3, 5, 7), dtype=jnp.float32)
    y2 = jax.random.normal(k4, (2, 2, 5, 7), dtype=jnp.float32)
    out2 = concatenation(y1, y2)
    jax.block_until_ready(out2)
    assert jnp.array_equal(out2, jnp.concatenate([y1, y2], axis=1))

    print("KERNEL_OK")
</pallas_src>

<mosaic_0001>
module attributes {stable_mosaic.version = 11 : i64} {
  func.func @_concat_tiled_kernel(%arg0: i32, %arg1: i32, %arg2: memref<2x1024xf32, #tpu.memory_space<vmem>>, %arg3: memref<2x1024xf32, #tpu.memory_space<vmem>>, %arg4: memref<2x1024xf32, #tpu.memory_space<vmem>>) attributes {dimension_semantics = [#tpu.dimension_semantics<parallel>, #tpu.dimension_semantics<parallel>], iteration_bounds = array<i64: 1, 2>, scalar_prefetch = 0 : i64, scratch_operands = 0 : i64, tpu.core_type = #tpu.core_type<tc>, window_params = [{transform_indices = @transform_0, window_bounds = array<i64: 2, 1024>}, {transform_indices = @transform_1, window_bounds = array<i64: 2, 1024>}, {transform_indices = @transform_2, window_bounds = array<i64: 2, 1024>}]} {
    %c1_i32 = arith.constant 1 : i32
    %0 = arith.cmpi slt, %arg1, %c1_i32 : i32
    %1 = arith.extui %0 : i1 to i32
    %c0_i32 = arith.constant 0 : i32
    %2 = arith.cmpi ne, %1, %c0_i32 : i32
    scf.if %2 {
      %c0 = arith.constant 0 : index
      %c0_2 = arith.constant 0 : index
      %6 = vector.load %arg2[%c0, %c0_2] : memref<2x1024xf32, #tpu.memory_space<vmem>>, vector<2x1024xf32>
      %c0_3 = arith.constant 0 : index
      %c0_4 = arith.constant 0 : index
      %7 = vector.load %arg4[%c0_3, %c0_4] : memref<2x1024xf32, #tpu.memory_space<vmem>>, vector<2x1024xf32>
      tpu.vector_store %arg4[%c0_3, %c0_4], %6 {strides = array<i32>} : memref<2x1024xf32, #tpu.memory_space<vmem>>, vector<2x1024xf32>,
    } else {
    }
    %c1_i32_0 = arith.constant 1 : i32
    %3 = arith.cmpi sge, %arg1, %c1_i32_0 : i32
    %4 = arith.extui %3 : i1 to i32
    %c0_i32_1 = arith.constant 0 : i32
    %5 = arith.cmpi ne, %4, %c0_i32_1 : i32
    scf.if %5 {
      %c0 = arith.constant 0 : index
      %c0_2 = arith.constant 0 : index
      %6 = vector.load %arg3[%c0, %c0_2] : memref<2x1024xf32, #tpu.memory_space<vmem>>, vector<2x1024xf32>
      %c0_3 = arith.constant 0 : index
      %c0_4 = arith.constant 0 : index
      %7 = vector.load %arg4[%c0_3, %c0_4] : memref<2x1024xf32, #tpu.memory_space<vmem>>, vector<2x1024xf32>
      tpu.vector_store %arg4[%c0_3, %c0_4], %6 {strides = array<i32>} : memref<2x1024xf32, #tpu.memory_space<vmem>>, vector<2x1024xf32>,
    } else {
    }
    return
  }
  func.func @transform_0(%arg0: i32, %arg1: i32) -> (i32, i32) {
    %c0_i32 = arith.constant 0 : i32
    %0 = arith.minsi %arg1, %c0_i32 : i32
    %c0_i32_0 = arith.constant 0 : i32
    return %arg0, %0 : i32, i32
  }
  func.func @transform_1(%arg0: i32, %arg1: i32) -> (i32, i32) {
    %c1_i32 = arith.constant 1 : i32
    %0 = arith.subi %arg1, %c1_i32 : i32
    %c0_i32 = arith.constant 0 : i32
    %1 = arith.maxsi %0, %c0_i32 : i32
    %c0_i32_0 = arith.constant 0 : i32
    return %arg0, %1 : i32, i32
  }
  func.func @transform_2(%arg0: i32, %arg1: i32) -> (i32, i32) {
    %c0_i32 = arith.constant 0 : i32
    return %arg0, %arg1 : i32, i32
  }
}

</mosaic_0001>

<bundles_post_ra>
// kernel: tpu_custom_call.1
= control target key start
LH: loop header
LB: loop body
LE: loop exit
PB: predicated region body
PF: predicated region fallthrough
CT: control target
= control target key end

     0   :  { %7 = vsyncpa [#allocation3], 0  ;;  %s942_s0 = inlined_call_operand.hbm [shape: f32[2,1024], index: 0, kind: input, shape index: {}]   ;;  %s943_s1 = inlined_call_operand.hbm [shape: f32[2,1024], index: 1, kind: input, shape index: {}]   ;;  %s944_s2 = inlined_call_operand.hbm [shape: f32[2,2048], index: 2, kind: output, shape index: {}]  }
   0x1   :  { %9 = vsyncpa [#allocation3 + $0x1], 0 }
   0x2   :  { %10 = vsyncpa [#allocation6], 0 }
   0x3   :  { %12 = vsyncpa [#allocation6 + $0x1], 0 }
   0x4   :  { %13 = vsyncpa [#allocation4], 0 }
   0x5   :  { %15 = vsyncpa [#allocation4 + $0x1], 0  ;;  %s741_s9 = smov 0   ;;  %s743_s10 = smov 0  }
   0x6   :  { %s745_s11 = smov 0   ;;  %s747_s12 = smov 0  }
   0x7   :  { %s749_s13 = smov 0   ;;  %s751_s14 = smov 0  }
   0x8   :  { %s753_s15 = smov 0   ;;  %s755_s16 = smov 0  }
   0x9   :  { %s757_s17 = smov 0   ;;  %s759_s18 = smov 0  }
   0xa LB: > { %s392_s19 = sadd.s32 4294967295, %s722_s18   ;;  %s393_s20 = sadd.s32 4294967294, %s722_s18   ;;  %s722_s18 = sphi %s759_s18, %s21_s18   ;;  %s718_s17 = sphi %s757_s17, %s962_s17   ;;  %s714_s16 = sphi %s755_s16, %s961_s16   ;;  %s710_s15 = sphi %s753_s15, %s932_s15   ;;  %s706_s14 = sphi %s751_s14, %s960_s14   ;;  %s702_s13 = sphi %s749_s13, %s927_s13   ;;  %s698_s12 = sphi %s747_s12, %s959_s12   ;;  %s694_s11 = sphi %s745_s11, %s958_s11   ;;  %s690_s10 = sphi %s743_s10, %s957_s10   ;;  %s686_s9 = sphi %s741_s9, %s956_s9  }
   0xb   : > { %s30_s21 = sadd.s32 1, %s718_s17  ;;  %p682_p1 = scmp.ne.s32.totalorder %s710_s15, 0 }
   0xc   : > { %p31_p0 = scmp.ge.s32.totalorder %s30_s21, 2  ;;  %p945_p2 = scmp.eq.s32.totalorder %s722_s18, 0 }
   0xd   : > { %p59_p3 = scmp.ne.s32.totalorder %s710_s15, %s706_s14  ;;  %p803_p5 = scmp.eq.s32.totalorder %s392_s19, 0 }
   0xe   : > { %s964_s21 = smov (%p31_p0, %s30_s21), 0  ;;  %p799_p4 = por %p682_p1, %p945_p2 }
   0xf   : > { %p809_p6 = por %p803_p5, %p59_p3  ;;  %s104_s25 = ssub.s32 %s718_s17, %s964_s21 }
  0x10   : > { %p106_p7 = scmp.eq.s32.totalorder %s104_s25, 0  ;;  %s108_s26 = sadd.s32 1, %s694_s11 }
  0x11   : > { %p118_p8 = scmp.ne.s32.totalorder %s694_s11, %s690_s10  ;;  %p119_p9 = scmp.eq.s32.totalorder %s392_s19, 1 }
  0x12   : > { %s817_s27 = scalar_select %p106_p7, %s694_s11, %s108_s26  }
  0x13   : > { %p124_p10 = scmp.ne.s32.totalorder %s690_s10, %s686_s9  ;;  %p125_p11 = scmp.eq.s32.totalorder %s393_s20, 1 }
  0x14   : > { %p823_p12 = por %p119_p9, %p118_p8  ;;  %p436_p1 = scmp.lt.s32.totalorder %s722_s18, 2 }
  0x15   : > { %p828_p0 = por %p125_p11, %p124_p10  ;;  %s160_s4 = sshll.u32 %s942_s0, 4  ;;  %s161_s4 = int_to_ptr.hbm [resolvable:$true] %s160_s4 }
  0x16   : > { %s724_s5 = smov [#allocation2]   ;;  %p840_p3 = pnand %p436_p1, %p799_p4 }
  0x17   : > { %s162_s6 = sshll.u32 %s724_s5, 4  ;;  %p405_p7 = scmp.ge.s32.totalorder %s722_s18, 1  ;;  %s163_s6 = int_to_ptr.vmem [resolvable:$true] %s162_s6 }
  0x18   : > { %p192_p8 = scmp.lt.s32.totalorder %s722_s18, 3  ;;  %s534_s8 = sshra.s32 %s161_s4, 4  ;;  %s535_s8 = int_to_ptr.hbm [resolvable:$true] %s534_s8 }
  0x19   : > { %s536_s14 = scalar_lea.hbm %s535_s8, 16  ;;  %p538_p10 = pneg %p840_p3 }
  0x1a   : > { %p537_p9 = scmp.ne.s32.totalorder %s535_s8, %s536_s14  ;;  %s541_s22 = scalar_lea.hbm %s942_s0, 16 }
  0x1b   : > { %p543_p2 = scmp.lt.s32.totalorder %s541_s22, %s536_s14 }
  0x1c   : > { %p539_p11 = pnand %p538_p10, %p537_p9 }
  0x1e   : > { %p540_p13 = pneg %p539_p11 }
  0x20   : > { %p545_p4 = pnand %p543_p2, %p540_p13 }
  0x22   : > { %548 = shalt.err (!%p545_p4)
}
  0x23   : > { %428 = dma.hbm_to_vmem [thread:$0]  (!%p840_p3), %s161_s4, 256, %s163_s6, [#allocation3]  }
  0x24   : > { %p857_p9 = pnand %p405_p7, %p192_p8  ;;  %p683_p10 = scmp.ne.s32.totalorder %s702_s13, 0 }
  0x25   : > { %p93_p2 = scmp.ne.s32.totalorder %s702_s13, %s698_s12  ;;  %p953_p13 = scmp.eq.s32.totalorder %s722_s18, 0 }
  0x26   : > { %s185_s5 = sshll.u32 %s943_s1, 4  ;;  %s725_s4 = smov [#allocation5]   ;;  %s186_s5 = int_to_ptr.hbm [resolvable:$true] %s185_s5 }
  0x27   : > { %p89_p11 = por %p683_p10, %p953_p13  ;;  %p868_p4 = por %p93_p2, %p803_p5 }
  0x28   : > { %s187_s6 = sshll.u32 %s725_s4, 4  ;;  %s564_s7 = sshra.s32 %s186_s5, 4  ;;  %s188_s6 = int_to_ptr.vmem [resolvable:$true] %s187_s6  ;;  %s565_s7 = int_to_ptr.hbm [resolvable:$true] %s564_s7 }
  0x29   : > { %p429_p3 = pnand %p436_p1, %p89_p11  ;;  %s566_s12 = scalar_lea.hbm %s565_s7, 16 }
  0x2a   : > { %p567_p7 = scmp.ne.s32.totalorder %s565_s7, %s566_s12  ;;  %p572_p2 = scmp.lt.s32.totalorder %s565_s7, %s943_s1 }
  0x2b   : > { %p568_p8 = pneg %p429_p3 }
  0x2d   : > { %p569_p10 = pnand %p568_p8, %p567_p7 }
  0x2f   : > { %p570_p5 = pneg %p569_p10 }
  0x31   : > { %p575_p13 = pnand %p572_p2, %p570_p5 }
  0x33   : > { %578 = shalt.err (!%p575_p13)
}
  0x34   : > { %431 = dma.hbm_to_vmem [thread:$0]  (!%p429_p3), %s186_s5, 256, %s188_s6, [#allocation6]  }
  0x35   : > { %196 = sbr.rel (%p857_p9) target bundleno = 98 (0x62), region = 28  ;;  %s198_s14 = sand.u32 (!%p857_p9), 1, %s710_s15  }
  0x36   : > { %s406_s19 = sshll.u32 (!%p857_p9), %s198_s14, 4  ;;  %s199_s20 = scalar_lea.sflag (!%p857_p9), [#allocation3], %s198_s14 }
  0x37   : > { %s202_s22 = scalar_lea.vmem (!%p857_p9), [#allocation2], %s406_s19 }
  0x3a   : > { %671 = dma.done.wait (%p809_p6), %s199_s20, 256  }
  0x3b   : > { %673 = vsyncadd (%p809_p6), %s199_s20, 4294967040  ;;  %s208_s30 = sand.u32 1, %s702_s13  }
  0x3c   : > { %s407_s3 = sshll.u32 %s208_s30, 4  ;;  %s209_s4 = scalar_lea.sflag [#allocation6], %s208_s30 }
  0x3d   : > { %s212_s5 = scalar_lea.vmem [#allocation5], %s407_s3 }
  0x3e   : > { %675 = dma.done.wait (%p868_p4), %s209_s4, 256  }
  0x3f   : > { %677 = vsyncadd (%p868_p4), %s209_s4, 4294967040  ;;  %s236_s25 = sand.u32 1, %s690_s10   ;;  %p409_p1 = scmp.ge.s32.totalorder %s714_s16, 1 }
  0x40   : > { %s408_s6 = sshll.u32 %s236_s25, 4 }
  0x41   : > { %s238_s7 = scalar_lea.vmem [#allocation7], %s408_s6  ;;  %250 = sbr.rel (%p409_p1) target bundleno = 73 (0x49), region = 40 }
  0x46   : > { %v251_v0 = vld [vmem:[%s202_s22] sm:$0xff]  ;;  %v252_v1 = vld [vmem:[%s202_s22 + $0x8] sm:$0xff] }
  0x47   : > { %253 = vst [vmem:[%s238_s7] sm:$0xff] %v251_v0 }
  0x48   : > { %254 = vst [vmem:[%s238_s7 + $0x8] sm:$0xff] %v252_v1 }
  0x49 PF: > { %p410_p6 = scmp.lt.s32.totalorder %s714_s16, 1 }
  0x4b   : > { %258 = sbr.rel (%p410_p6) target bundleno = 83 (0x53), region = 44 }
  0x50   : > { %v259_v2 = vld [vmem:[%s212_s5] sm:$0xff]  ;;  %v260_v3 = vld [vmem:[%s212_s5 + $0x8] sm:$0xff] }
  0x51   : > { %261 = vst [vmem:[%s238_s7] sm:$0xff] %v259_v2 }
  0x52   : > { %262 = vst [vmem:[%s238_s7 + $0x8] sm:$0xff] %v260_v3 }
  0x53 PF: > { %s418_s24 = sshll.u32 %s714_s16, 4  ;;  %s279_s8 = sshll.u32 %s238_s7, 4  ;;  %s280_s8 = int_to_ptr.vmem [resolvable:$true] %s279_s8 }
  0x54   : > { %s277_s23 = scalar_lea.hbm %s944_s2, %s418_s24  ;;  %s264_s19 = scalar_lea.sflag [#allocation4], %s236_s25 }
  0x55   : > { %s281_s14 = sshll.u32 %s277_s23, 4  ;;  %s614_s16 = scalar_lea.hbm %s944_s2, 32  ;;  %s282_s14 = int_to_ptr.hbm [resolvable:$true] %s281_s14 }
  0x56   : > { %s608_s20 = sshra.s32 %s282_s14, 4  ;;  %s609_s20 = int_to_ptr.hbm [resolvable:$true] %s608_s20 }
  0x57   : > { %s610_s22 = scalar_lea.hbm %s609_s20, 16  ;;  %p615_p3 = scmp.lt.s32.totalorder %s609_s20, %s944_s2 }
  0x58   : > { %p611_p9 = scmp.ne.s32.totalorder %s609_s20, %s610_s22  ;;  %p616_p7 = scmp.lt.s32.totalorder %s614_s16, %s610_s22 }
  0x5a   : > { %p612_p11 = pnand %p611_p9, %p823_p12  ;;  %p617_p8 = por %p616_p7, %p615_p3 }
  0x5c   : > { %p613_p4 = pneg %p612_p11 }
  0x5e   : > { %p618_p10 = pnand %p617_p8, %p613_p4 }
  0x60   : > { %621 = shalt.err (!%p618_p10)
}
  0x61   : > { %423 = dma.vmem_to_hbm [thread:$0]  (%p823_p12), %s280_s8, 256, %s282_s14, %s264_s19  }
  0x62 PF: > { %s293_s25 = sand.u32 1, %s686_s9   ;;  %p955_p5 = scmp.ge.s32.totalorder %s722_s18, 2 }
  0x63   : > { %s294_s6 = scalar_lea.sflag [#allocation4], %s293_s25 }
  0x64   : > { %p433_p2 = pnand %p955_p5, %p828_p0 }
  0x66   : > { %p434_p13 = pneg %p433_p2 }
  0x68   : > { %679 = dma.done.wait (%p434_p13), %s294_s6, 256  }
  0x69   : > { %681 = vsyncadd (%p434_p13), %s294_s6, 4294967040  ;;  %s21_s18 = sadd.s32 1, %s722_s18   ;;  %s956_s9 = smov %s690_s10 }
  0x6a   : > { %p18_p1 = scmp.ge.s32.totalorder %s21_s18, 4   ;;  %s957_s10 = smov %s694_s11 }
  0x6b   : > { %s958_s11 = smov %s817_s27  ;;  %s959_s12 = smov %s702_s13 }
  0x6c   : > { %s927_s13 = smov 0   ;;  %s960_s14 = smov %s710_s15 }
  0x6d   : > { %s932_s15 = smov 0   ;;  %s961_s16 = smov %s718_s17 }
  0x6e   : > { %s962_s17 = smov %s964_s21  ;;  %20 = sbr.rel (!%p18_p1) target bundleno = 10 (0xa), region = 94 }
  0x73   :  { %300 = vsyncpa [#allocation3], 1 }
  0x74   :  { %302 = vsyncpa [#allocation3 + $0x1], 1 }
  0x75   :  { %303 = vsyncpa [#allocation6], 1 }
  0x76   :  { %305 = vsyncpa [#allocation6 + $0x1], 1 }
  0x77   :  { %306 = vsyncpa [#allocation4], 1 }
  0x78   :  { %308 = vsyncpa [#allocation4 + $0x1], 1 }

</bundles_post_ra>
